<compile_context>
chip_gen: v6e
topology: v6e:2x2x1
jax: 0.10.0
libtpu: 0.0.40
codegen_flags: <defaults>
</compile_context>

<pallas_src>
import jax
import jax.numpy as jnp
from jax.experimental import pallas as pl
from jax.experimental.pallas import tpu as pltpu  # noqa: F401  (TPU backend assumed)

# ---------------- configuration (small synthetic shapes) ----------------
B = 2        # batch
L = 8        # sequence length
XD = 32      # x_size (hdim1)
YD = 16      # y_size (hdim2)
NEG = -1e30  # stands in for -inf in masked_fill (identical softmax result)


def bilinear_seq_attn_kernel(x_ref, y_ref, mask_ref, wt_ref, b_ref, alpha_ref):
    x = x_ref[...]            # (B, L, XD)
    y = y_ref[...]            # (B, YD)
    mask = mask_ref[...]      # (B, L), 1.0 = padding, 0.0 = real token

    # Wy = linear(y) = y @ W^T + b  -- single MXU matmul (W pre-transposed).
    wy = jnp.dot(y, wt_ref[...], preferred_element_type=jnp.float32) + b_ref[...]  # (B, XD)

    # xWy[b, l] = sum_h x[b, l, h] * Wy[b, h]
    # VPU multiply + lane reduction instead of B tiny batched matmuls.
    s = jnp.sum(x * wy[:, None, :], axis=-1)          # (B, L)

    # masked_fill(x_mask, -inf) fused with a hand-rolled softmax over L.
    s = jnp.where(mask > 0.5, NEG, s)
    m = jnp.max(s, axis=-1, keepdims=True)            # (B, 1)
    e = jnp.exp(s - m)                                 # masked entries -> 0
    denom = jnp.sum(e, axis=-1, keepdims=True)         # (B, 1)
    alpha_ref[...] = e * pl.reciprocal(denom, approx=False)   # EUP reciprocal path


def bilinear_seq_attn(x, y, x_mask, w, b):
    """x: (B, L, XD), y: (B, YD), x_mask: (B, L) with 1 = padding.
    w: (XD, YD) PyTorch nn.Linear weight layout, b: (XD,)."""
    wt = jnp.asarray(w).T                     # (YD, XD): avoid in-kernel transpose
    b2 = jnp.asarray(b).reshape(1, XD)
    return pl.pallas_call(
        bilinear_seq_attn_kernel,
        out_shape=jax.ShapeDtypeStruct((B, L), jnp.float32),
    )(x, y, x_mask.astype(jnp.float32), wt, b2)


# ---------------- pure-JAX reference (mirrors the PyTorch forward, eval mode) ----------------
def bilinear_seq_attn_ref(x, y, x_mask, w, b):
    wy = y @ w.T + b                                   # (B, XD)
    xwy = jnp.einsum("blh,bh->bl", x, wy)              # (B, L)
    xwy = jnp.where(x_mask > 0.5, NEG, xwy)
    return jax.nn.softmax(xwy, axis=-1)


if __name__ == "__main__":
    key = jax.random.PRNGKey(0)
    kx, ky, kw, kb = jax.random.split(key, 4)

    x = jax.random.normal(kx, (B, L, XD), jnp.float32)
    y = jax.random.normal(ky, (B, YD), jnp.float32)
    w = jax.random.normal(kw, (XD, YD), jnp.float32) * 0.1
    b = jax.random.normal(kb, (XD,), jnp.float32) * 0.1

    # mask: 1 = padding. Row 0 fully valid, row 1 has the last 3 positions padded.
    lengths = jnp.array([L, 5])
    x_mask = (jnp.arange(L)[None, :] >= lengths[:, None]).astype(jnp.float32)

    out = jax.block_until_ready(bilinear_seq_attn(x, y, x_mask, w, b))
    ref = bilinear_seq_attn_ref(x, y, x_mask, w, b)

    assert out.shape == (B, L)
    assert jnp.allclose(out, ref, rtol=1e-4, atol=1e-5), "mismatch vs reference"
    print("KERNEL_OK")
</pallas_src>

<mosaic_0001>
module attributes {stable_mosaic.version = 11 : i64} {
  func.func @bilinear_seq_attn_kernel(%arg0: memref<2x8x32xf32, #tpu.memory_space<vmem>>, %arg1: memref<2x16xf32, #tpu.memory_space<vmem>>, %arg2: memref<2x8xf32, #tpu.memory_space<vmem>>, %arg3: memref<16x32xf32, #tpu.memory_space<vmem>>, %arg4: memref<1x32xf32, #tpu.memory_space<vmem>>, %arg5: memref<2x8xf32, #tpu.memory_space<vmem>>) attributes {dimension_semantics = [], scalar_prefetch = 0 : i64, scratch_operands = 0 : i64, tpu.core_type = #tpu.core_type<tc>} {
    %c0 = arith.constant 0 : index
    %c0_0 = arith.constant 0 : index
    %c0_1 = arith.constant 0 : index
    %0 = vector.load %arg0[%c0, %c0_0, %c0_1] : memref<2x8x32xf32, #tpu.memory_space<vmem>>, vector<2x8x32xf32>
    %c0_2 = arith.constant 0 : index
    %c0_3 = arith.constant 0 : index
    %1 = vector.load %arg1[%c0_2, %c0_3] : memref<2x16xf32, #tpu.memory_space<vmem>>, vector<2x16xf32>
    %c0_4 = arith.constant 0 : index
    %c0_5 = arith.constant 0 : index
    %2 = vector.load %arg2[%c0_4, %c0_5] : memref<2x8xf32, #tpu.memory_space<vmem>>, vector<2x8xf32>
    %c0_6 = arith.constant 0 : index
    %c0_7 = arith.constant 0 : index
    %3 = vector.load %arg3[%c0_6, %c0_7] : memref<16x32xf32, #tpu.memory_space<vmem>>, vector<16x32xf32>
    %cst = arith.constant dense<0.000000e+00> : vector<2x32xf32>
    %4 = tpu.matmul %1, %3, %cst {dimension_numbers = #tpu.dot_dimension_numbers<[1], [0], [0], [1], [0, 0, 1, 1], [], []>} : vector<2x16xf32>, vector<16x32xf32>, vector<2x32xf32> -> vector<2x32xf32>
    %c0_8 = arith.constant 0 : index
    %c0_9 = arith.constant 0 : index
    %5 = vector.load %arg4[%c0_8, %c0_9] : memref<1x32xf32, #tpu.memory_space<vmem>>, vector<1x32xf32>
    %6 = vector.broadcast %5 : vector<1x32xf32> to vector<2x32xf32>
    %7 = arith.addf %4, %6 : vector<2x32xf32>
    %8 = vector.shape_cast %7 : vector<2x32xf32> to vector<2x1x32xf32>
    %9 = vector.broadcast %8 : vector<2x1x32xf32> to vector<2x8x32xf32>
    %10 = arith.mulf %0, %9 : vector<2x8x32xf32>
    %cst_10 = arith.constant dense<0.000000e+00> : vector<2x8xf32>
    %11 = vector.multi_reduction <add>, %10, %cst_10 [2] : vector<2x8x32xf32> to vector<2x8xf32>
    %cst_11 = arith.constant 5.000000e-01 : f32
    %12 = vector.broadcast %cst_11 : f32 to vector<2x8xf32>
    %13 = arith.cmpf ogt, %2, %12 : vector<2x8xf32>
    %cst_12 = arith.constant -1.000000e+30 : f32
    %14 = vector.broadcast %cst_12 : f32 to vector<2x8xf32>
    %15 = arith.select %13, %14, %11 : vector<2x8xi1>, vector<2x8xf32>
    %cst_13 = arith.constant dense<0xFF800000> : vector<2xf32>
    %16 = vector.multi_reduction <maximumf>, %15, %cst_13 [1] : vector<2x8xf32> to vector<2xf32>
    %17 = vector.shape_cast %16 : vector<2xf32> to vector<2x1xf32>
    %18 = vector.broadcast %17 : vector<2x1xf32> to vector<2x8xf32>
    %19 = arith.subf %15, %18 : vector<2x8xf32>
    %20 = math.exp %19 : vector<2x8xf32>
    %cst_14 = arith.constant dense<0.000000e+00> : vector<2xf32>
    %21 = vector.multi_reduction <add>, %20, %cst_14 [1] : vector<2x8xf32> to vector<2xf32>
    %22 = vector.shape_cast %21 : vector<2xf32> to vector<2x1xf32>
    %23 = tpu.reciprocal %22 : vector<2x1xf32> -> vector<2x1xf32>
    %24 = vector.broadcast %23 : vector<2x1xf32> to vector<2x8xf32>
    %25 = arith.mulf %20, %24 : vector<2x8xf32>
    %c0_15 = arith.constant 0 : index
    %c0_16 = arith.constant 0 : index
    %26 = vector.load %arg5[%c0_15, %c0_16] : memref<2x8xf32, #tpu.memory_space<vmem>>, vector<2x8xf32>
    tpu.vector_store %arg5[%c0_15, %c0_16], %25 {strides = array<i32>} : memref<2x8xf32, #tpu.memory_space<vmem>>, vector<2x8xf32>,
    return
  }
}

</mosaic_0001>

<bundles_post_ra>
// kernel: tpu_custom_call.1
= control target key start
LH: loop header
LB: loop body
LE: loop exit
PB: predicated region body
PF: predicated region fallthrough
CT: control target
= control target key end

     0   :  { %10 = vsyncpa [#allocation3], 0  ;;  %s406_s0 = inlined_call_operand.hbm [shape: f32[2,8,32], index: 0, kind: input, shape index: {}]   ;;  %s407_s1 = inlined_call_operand.hbm [shape: f32[2,16], index: 1, kind: input, shape index: {}]   ;;  %s408_s2 = inlined_call_operand.vmem [shape: f32[2,8], index: 2, kind: input, shape index: {}]   ;;  %s409_s3 = inlined_call_operand.hbm [shape: f32[16,32], index: 3, kind: input, shape index: {}]   ;;  %s410_s4 = inlined_call_operand.vmem [shape: f32[1,32], index: 4, kind: input, shape index: {}]   ;;  %s411_s5 = inlined_call_operand.hbm [shape: f32[2,8], index: 5, kind: output, shape index: {}]  }
   0x1   :  { %11 = vsyncpa [#allocation6], 0 }
   0x2   :  { %12 = vsyncpa [#allocation4], 0  ;;  %s346_s18 = smov [#allocation5]   ;;  %s347_s20 = smov [#allocation2]  }
   0x3   :  { %s31_s19 = sshll.u32 %s346_s18, 4  ;;  %s18_s21 = sshll.u32 %s347_s20, 4  ;;  %s32_s19 = int_to_ptr.vmem [resolvable:$true] %s31_s19  ;;  %s19_s21 = int_to_ptr.vmem [resolvable:$true] %s18_s21 }
   0x4   :  { %s268_s22 = scalar_lea.vmem %s32_s19, 32  ;;  %p273_p1 = scmp.lt.s32.totalorder %s32_s19, %s32_s19 }
   0x5   :  { %p269_p0 = scmp.ne.s32.totalorder %s32_s19, %s268_s22  ;;  %p274_p2 = scmp.lt.s32.totalorder %s268_s22, %s268_s22 }
   0x7   :  { %p275_p3 = por %p274_p2, %p273_p1 }
   0x9   :  { %p276_p4 = pnand %p275_p3, %p269_p0 }
   0xb   :  { %279 = shalt.err (!%p276_p4)
}
   0xc   :  { %34 = dma.hbm_to_vmem [thread:$0]  %s407_s1, 32, %s32_s19, [#allocation6]  }
   0xd   :  { %s288_s25 = scalar_lea.vmem %s19_s21, 256  ;;  %p293_p6 = scmp.lt.s32.totalorder %s19_s21, %s19_s21 }
   0xe   :  { %p289_p5 = scmp.ne.s32.totalorder %s19_s21, %s288_s25  ;;  %p294_p7 = scmp.lt.s32.totalorder %s288_s25, %s288_s25 }
  0x10   :  { %p295_p8 = por %p294_p7, %p293_p6 }
  0x12   :  { %p296_p9 = pnand %p295_p8, %p289_p5 }
  0x14   :  { %299 = shalt.err (!%p296_p9)
}
  0x15   :  { %s348_s26 = smov 128   ;;  %s349_s27 = smov 8  }
  0x16   :  { %24 = dma.hbm_to_vmem [thread:$0]  %s406_s0, 256, %s19_s21, [#allocation3], %s348_s26, %s348_s26, %s349_s27  }
  0x17   :  { %s350_s30 = smov [#allocation7]  }
  0x18   :  { %s42_s6 = sshll.u32 %s350_s30, 4  ;;  %s43_s6 = int_to_ptr.vmem [resolvable:$true] %s42_s6 }
  0x19   :  { %s308_s7 = scalar_lea.vmem %s43_s6, 256  ;;  %p313_p11 = scmp.lt.s32.totalorder %s43_s6, %s43_s6 }
  0x1a   :  { %p309_p10 = scmp.ne.s32.totalorder %s43_s6, %s308_s7  ;;  %p314_p12 = scmp.lt.s32.totalorder %s308_s7, %s308_s7 }
  0x1c   :  { %p315_p13 = por %p314_p12, %p313_p11 }
  0x1e   :  { %p316_p0 = pnand %p315_p13, %p309_p10 }
  0x20   :  { %319 = shalt.err (!%p316_p0)
}
  0x21   :  { %48 = dma.hbm_to_vmem [thread:$0]  %s409_s3, 256, %s43_s6, [#allocation6], %s348_s26, %s348_s26, %s349_s27  }
  0x22   :  { %340 = dma.done.wait [#allocation3], 256  }
  0x23   :  { %341 = vsyncadd [#allocation3], 4294967040 }
  0x24   :  { %342 = dma.done.wait [#allocation6], 288  }
  0x25   :  { %343 = vsyncadd [#allocation6], 4294967008  ;;  %v351_v0 = vmov 0.0   ;;  %vm352_vm0 = vmmov 0   ;;  %v65_v1 = vld [vmem:[#allocation7 + $0x8] sm:$0xff]  ;;  %v64_v2 = vld [vmem:[#allocation7] sm:$0xff]  ;;  %v151_v4 = vlaneseq }
  0x26   :  { %240 = vmatprep.subr.mxu0 %v351_v0  ;;  %244 = vmatprep.mubr.msk.f32.mxu0 %vm352_vm0, %v351_v0  ;;  %v62_v3 = vld [vmem:[#allocation5] sm:$0x3]  ;;  %vm73_vm1 = vcmask 130048   ;;  %v353_v8 = vmov 1966171168   ;;  %v60_v20 = vld [vmem:[#allocation2] sm:$0xff] }
  0x27   :  { %241 = vmatpush3.msra.mxu0 %v65_v1  ;;  %v152_v5 = vshrl.u32 %v151_v4, 7  ;;  %v193_v6 = vand.u32 127, %v151_v4  ;;  %v149_v9 = vunpack.c.l.s4 %v353_v8  ;;  %v235_v11 = vld [vmem:[%s410_s4] ss:$0 sm:$0xff]  ;;  %vm182_vm2 = vcmask 261120   ;;  %v61_v23 = vld [vmem:[#allocation2 + $0x8] sm:$0xff] }
  0x28   :  { %242 = vmatprep.subr.mxu0 %v351_v0  ;;  %v63_v30 = vld [vmem:[%s408_s2] sm:$0x3]  ;;  %vm202_vm3 = vcmask 1041409   ;;  %vm206_vm5 = vcmask 58368   ;;  %s354_s2 = smov [#allocation8]  }
  0x29   :  { %243 = vmatpush3.msra.mxu0 %v64_v2  ;;  %v196_v7 = vsub.s32 %v193_v6, %v152_v5  ;;  %v150_v10 = vunpack.c.0.s8 %v149_v9  ;;  %v172_v17 = vsub.s32 0, %v152_v5  ;;  %vm189_vm4 = vcmp.gt.f32.partialorder %v63_v30, 0.5  ;;  %s225_s10 = sshll.u32 %s354_s2, 4  ;;  %s226_s10 = int_to_ptr.vmem [resolvable:$true] %s225_s10 }
  0x2a   :  { %245 = vmatmul.mubr.msk.f32.vlgmr.msra.gmra.mxu0 %vm73_vm1, %v62_v3  ;;  %s320_s11 = scalar_lea.vmem %s226_s10, 32  ;;  %p325_p2 = scmp.lt.s32.totalorder %s226_s10, %s226_s10 }
  0x2b   :  { %v153_v12 = vsub.s32 %v150_v10, %v152_v5  ;;  %p321_p1 = scmp.ne.s32.totalorder %s226_s10, %s320_s11  ;;  %p326_p3 = scmp.lt.s32.totalorder %s320_s11, %s320_s11 }
  0x2d   :  { %p327_p4 = por %p326_p3, %p325_p2 }
  0x2f   :  { %p328_p5 = pnand %p327_p4, %p321_p1 }
  0xea   :  { %v143_v13 = vpop.f32.mrf.mxu0 }
  0xeb   :  { %v144_v14 = vadd.f32 %v235_v11, %v143_v13 }
  0xec   :  { %v246_v15 = vpop.f32.mrf.mxu0 }
  0xed   :  { %v154_v16 = vrot.slane %v144_v14, %v153_v12 }
  0xef   :  { %v155_v18 = vcombine.high %v154_v16, %v154_v16  ;;  %v162_v19 = vrot.slane %v154_v16, %v153_v12 }
  0xf1   :  { %v173_v21 = vrot.slane %v162_v19, %v172_v17  ;;  %v169_v22 = vrot.slane %v155_v18, %v153_v12 }
  0xf3   :  { %v180_v24 = vmul.f32 %v173_v21, %v60_v20  ;;  %v177_v25 = vrot.slane %v169_v22, %v172_v17 }
  0xf5   :  { %v183_v26 = vsel %vm182_vm2, %v180_v24, 0.0  ;;  %v181_v27 = vmul.f32 %v177_v25, %v61_v23 }
  0xf6   :  { %184 = vadd.xlane.f32.xlu0 %v183_v26 }
  0xf7   :  { %v186_v28 = vsel %vm182_vm2, %v181_v27, 0.0 }
  0xfa   :  { %187 = vadd.xlane.f32.xlu0 %v186_v28 }
 0x17f   :  { %v185_v29 = vpop.xlane.xlu0 %184 }
 0x180   :  { %v197_v32 = vrot.slane %v185_v29, %v196_v7 }
 0x183   :  { %v188_v31 = vpop.xlane.xlu0 %187 }
 0x184   :  { %v201_v33 = vrot.slane %v188_v31, %v196_v7 }
 0x186   :  { %v203_v34 = vsel %vm202_vm3, %v201_v33, %v197_v32 }
 0x187   :  { %v205_v35 = vsel %vm189_vm4, -1e+30, %v203_v34 }
 0x188   :  { %v207_v36 = vsel %vm206_vm5, %v205_v35, -inf }
 0x189   :  { %208 = vmax.xlane.f32.xlu1 %v207_v36 }
 0x212   :  { %v209_v37 = vpop.xlane.xlu1 %208 }
 0x213   :  { %v210_v38 = vsub.f32 %v205_v35, %v209_v37 }
 0x215   :  { %v211_v39 = vmul.f32 1.442695, %v210_v38 }
 0x217   :  { %256 = vpow2.f32 %v211_v39 }
 0x224   :  { %v257_v40 = vpop.eup %256 }
 0x225   :  { %v213_v41 = vsel %vm206_vm5, %v257_v40, 0.0 }
 0x226   :  { %214 = vadd.xlane.f32.xlu1 %v213_v41 }
 0x2af   :  { %v215_v42 = vpop.xlane.xlu1 %214 }
 0x2b0   :  { %258 = vrcp.f32 %v215_v42 }
 0x2bd   :  { %v259_v43 = vpop.eup %258 }
 0x2be   :  { %v217_v44 = vmul.f32 %v259_v43, %v257_v40 }
 0x2c0   :  { %218 = vst.msk [vmem:[#allocation8] sm:$0x3] %vm206_vm5, %v217_v44 }
 0x2c1   :  { %331 = shalt.err (!%p328_p5)
}
 0x2c2   :  { %228 = dma.vmem_to_hbm [thread:$0]  %s226_s10, 32, %s411_s5, [#allocation4]  }
 0x2c3   :  { %344 = dma.done.wait [#allocation4], 32  }
 0x2c4   :  { %345 = vsyncadd [#allocation4], 4294967264 }
 0x2c5   :  { %232 = vsyncpa [#allocation3], 1 }
 0x2c6   :  { %233 = vsyncpa [#allocation6], 1 }
 0x2c7   :  { %234 = vsyncpa [#allocation4], 1 }

</bundles_post_ra>
